<compile_context>
chip_gen: v5e
topology: v5e:2x2
jax: 0.10.0
libtpu: 0.0.40
codegen_flags: <defaults>
</compile_context>

<pallas_src>
import functools

import jax
import jax.numpy as jnp
from jax.experimental import pallas as pl
from jax.experimental.pallas import tpu as pltpu

D_IN = 4
D_HID = 128
D_OUT = 5
D_OUT_PAD = 8            # narrow padded output width (was 128)
BN_EPS = 1e-5


def _round_up(a, b):
    return ((a + b - 1) // b) * b


def pinn_kernel(x_ref, w1_ref, b1_ref, w2_ref, b2_ref, w3_ref, b3_ref, o_ref):
    x = x_ref[...]                                   # (TM, 4)   f32
    w1 = w1_ref[...]                                 # (4, 128)  f32

    # Linear(4 -> 128): K=4, so do it as 4 broadcast-FMAs on the VPU instead
    # of burning a full MXU pass at 4/256 K-utilization.
    h1 = x[:, 0:1] * w1[0:1, :]
    h1 = h1 + x[:, 1:2] * w1[1:2, :]
    h1 = h1 + x[:, 2:3] * w1[2:3, :]
    h1 = h1 + x[:, 3:4] * w1[3:4, :]
    h1 = jnp.maximum(h1 + b1_ref[...], 0.0)          # ReLU

    # BatchNorm1d(128): folded into w2/b2 (eval mode).  Dropout: identity.
    mm_dtype = w2_ref.dtype                          # f32 or bf16 operands

    # Linear(128 -> 128) + ReLU   (BN-folded weights), f32 accumulation.
    h2 = jnp.dot(h1.astype(mm_dtype), w2_ref[...],
                 preferred_element_type=jnp.float32)
    h2 = jnp.maximum(h2 + b2_ref[...], 0.0)

    # Linear(128 -> 5), zero-padded to 8 output lanes.
    out = jnp.dot(h2.astype(mm_dtype), w3_ref[...],
                  preferred_element_type=jnp.float32)
    o_ref[...] = (out + b3_ref[...]).astype(o_ref.dtype)


@functools.partial(jax.jit, static_argnames=("tile_m", "use_bf16"))
def pinn_forward(x, params, tile_m=4096, use_bf16=False):
    """Eval-mode forward of the PINN module.  x: (N, 4) f32 -> (N, 5) f32."""
    (w1, b1, gamma, beta, running_mean, running_var, w2, b2, w3, b3) = params

    # ---- fold BatchNorm (eval) into the second linear layer (exact) ----
    bn_scale = gamma / jnp.sqrt(running_var + BN_EPS)          # (1, 128)
    bn_shift = beta - running_mean * bn_scale                  # (1, 128)
    w2f = w2 * bn_scale.reshape(D_HID, 1)                      # row-scale
    b2f = b2 + bn_shift @ w2                                   # (1, 128)

    # ---- pad the last layer to an 8-wide output (narrow HBM writeback) ----
    w3p = jnp.pad(w3, ((0, 0), (0, D_OUT_PAD - D_OUT)))        # (128, 8)
    b3p = jnp.pad(b3, ((0, 0), (0, D_OUT_PAD - D_OUT)))        # (1, 8)

    # Optional bf16 MXU operands (f32 accumulate).  Biases/first layer stay f32.
    if use_bf16:
        w2f = w2f.astype(jnp.bfloat16)
        w3p = w3p.astype(jnp.bfloat16)

    # ---- batch tiling: big tiles, >=2 grid steps for mid/large batches ----
    n = x.shape[0]
    n8 = _round_up(max(n, 1), 8)                 # sublane multiple
    if n8 >= 2048:
        # keep both v7x TensorCores busy (parallel grid axis shards steps)
        tile = min(tile_m, _round_up((n8 + 1) // 2, 8))
    else:
        tile = min(tile_m, n8)
    tile = max(8, _round_up(tile, 8))
    n_pad = _round_up(n8, tile)
    if n_pad != n:
        x = jnp.pad(x, ((0, n_pad - n), (0, 0)))

    grid = (n_pad // tile,)

    def full_spec(shape):
        return pl.BlockSpec(shape, lambda i: (0,) * len(shape))

    wbytes = (w1.size * w1.dtype.itemsize + b1.size * 4
              + w2f.size * w2f.dtype.itemsize + b2f.size * 4
              + w3p.size * w3p.dtype.itemsize + b3p.size * 4)
    flops = 2 * n_pad * (D_IN * D_HID + D_HID * D_HID + D_HID * D_OUT_PAD)
    bytes_accessed = 4 * n_pad * D_IN + 4 * n_pad * D_OUT_PAD + wbytes

    out = pl.pallas_call(
        pinn_kernel,
        out_shape=jax.ShapeDtypeStruct((n_pad, D_OUT_PAD), jnp.float32),
        grid_spec=pltpu.PrefetchScalarGridSpec(
            num_scalar_prefetch=0,
            grid=grid,
            in_specs=[
                pl.BlockSpec((tile, D_IN), lambda i: (i, 0)),   # x
                full_spec((D_IN, D_HID)),                       # w1
                full_spec((1, D_HID)),                          # b1
                full_spec((D_HID, D_HID)),                      # w2 (BN-folded)
                full_spec((1, D_HID)),                          # b2 (BN-folded)
                full_spec((D_HID, D_OUT_PAD)),                  # w3 (padded)
                full_spec((1, D_OUT_PAD)),                      # b3 (padded)
            ],
            out_specs=pl.BlockSpec((tile, D_OUT_PAD), lambda i: (i, 0)),
        ),
        compiler_params=pltpu.CompilerParams(
            dimension_semantics=("parallel",),
            vmem_limit_bytes=32 * 1024 * 1024),
        cost_estimate=pl.CostEstimate(
            flops=flops, transcendentals=0, bytes_accessed=bytes_accessed),
    )(x, w1, b1, w2f, b2f, w3p, b3p)

    return out[:n, :D_OUT]


def init_params(key):
    """Deterministic init matching the PyTorch module's parameter shapes."""
    k1, k2, k3, k4, k5, k6 = jax.random.split(key, 6)

    def linear(kw, kb, fan_in, fan_out):
        bound = 1.0 / jnp.sqrt(jnp.float32(fan_in))
        # stored as (in, out) so kernel does x @ W  (== PyTorch x @ W.T)
        w = jax.random.uniform(kw, (fan_in, fan_out), jnp.float32, -bound, bound)
        b = jax.random.uniform(kb, (1, fan_out), jnp.float32, -bound, bound)
        return w, b

    w1, b1 = linear(k1, k2, D_IN, D_HID)
    w2, b2 = linear(k3, k4, D_HID, D_HID)
    w3, b3 = linear(k5, k6, D_HID, D_OUT)

    # BatchNorm1d(128) fresh-init running stats / affine params.
    gamma = jnp.ones((1, D_HID), jnp.float32)
    beta = jnp.zeros((1, D_HID), jnp.float32)
    running_mean = jnp.zeros((1, D_HID), jnp.float32)
    running_var = jnp.ones((1, D_HID), jnp.float32)

    return (w1, b1, gamma, beta, running_mean, running_var, w2, b2, w3, b3)


def pinn_reference(x, params):
    """Pure-JAX reference of the PyTorch eval-mode forward."""
    (w1, b1, gamma, beta, running_mean, running_var, w2, b2, w3, b3) = params
    h1 = jnp.maximum(x @ w1 + b1, 0.0)
    h1 = (h1 - running_mean) / jnp.sqrt(running_var + BN_EPS) * gamma + beta
    h2 = jnp.maximum(h1 @ w2 + b2, 0.0)
    return h2 @ w3 + b3


if __name__ == "__main__":
    key = jax.random.PRNGKey(0)
    kx, kp = jax.random.split(key)
    params = init_params(kp)

    # Small batch (single tiny tile).
    x = jax.random.normal(kx, (16, D_IN), jnp.float32)
    out = jax.block_until_ready(pinn_forward(x, params))
    ref = pinn_reference(x, params)
    assert out.shape == (16, D_OUT), out.shape
    assert jnp.allclose(out, ref, atol=1e-5, rtol=1e-5), "mismatch (small)"

    # Ragged batch, one grid step (padded tail rows sliced off).
    x2 = jax.random.normal(kx, (1030, D_IN), jnp.float32)
    out2 = jax.block_until_ready(pinn_forward(x2, params))
    ref2 = pinn_reference(x2, params)
    assert out2.shape == (1030, D_OUT), out2.shape
    assert jnp.allclose(out2, ref2, atol=1e-5, rtol=1e-5), "mismatch (ragged)"

    # Mid-size batch -> forced >= 2 grid steps (megacore path on v7x).
    x3 = jax.random.normal(kx, (2500, D_IN), jnp.float32)
    out3 = jax.block_until_ready(pinn_forward(x3, params))
    ref3 = pinn_reference(x3, params)
    assert out3.shape == (2500, D_OUT), out3.shape
    assert jnp.allclose(out3, ref3, atol=1e-5, rtol=1e-5), "mismatch (2-step)"

    # bf16 MXU-operand path (f32 accumulate) with a looser tolerance.
    out4 = jax.block_until_ready(pinn_forward(x2, params, use_bf16=True))
    assert out4.shape == (1030, D_OUT), out4.shape
    assert jnp.allclose(out4, ref2, atol=5e-2, rtol=5e-2), "mismatch (bf16)"

    print("KERNEL_OK")
</pallas_src>

<mosaic_0001>
module attributes {stable_mosaic.version = 11 : i64} {
  func.func @pinn_kernel(%arg0: i32, %arg1: memref<16x4xf32, #tpu.memory_space<vmem>>, %arg2: memref<4x128xf32, #tpu.memory_space<vmem>>, %arg3: memref<1x128xf32, #tpu.memory_space<vmem>>, %arg4: memref<128x128xf32, #tpu.memory_space<vmem>>, %arg5: memref<1x128xf32, #tpu.memory_space<vmem>>, %arg6: memref<128x8xf32, #tpu.memory_space<vmem>>, %arg7: memref<1x8xf32, #tpu.memory_space<vmem>>, %arg8: memref<16x8xf32, #tpu.memory_space<vmem>>) attributes {dimension_semantics = [#tpu.dimension_semantics<parallel>], iteration_bounds = array<i64: 1>, scalar_prefetch = 0 : i64, scratch_operands = 0 : i64, tpu.core_type = #tpu.core_type<tc>, window_params = [{transform_indices = @transform_0, window_bounds = array<i64: 16, 4>}, {pipeline_mode = #tpu.pipeline_mode<synchronous>, transform_indices = @transform_1, window_bounds = array<i64: 4, 128>}, {pipeline_mode = #tpu.pipeline_mode<synchronous>, transform_indices = @transform_2, window_bounds = array<i64: 1, 128>}, {pipeline_mode = #tpu.pipeline_mode<synchronous>, transform_indices = @transform_3, window_bounds = array<i64: 128, 128>}, {pipeline_mode = #tpu.pipeline_mode<synchronous>, transform_indices = @transform_4, window_bounds = array<i64: 1, 128>}, {pipeline_mode = #tpu.pipeline_mode<synchronous>, transform_indices = @transform_5, window_bounds = array<i64: 128, 8>}, {pipeline_mode = #tpu.pipeline_mode<synchronous>, transform_indices = @transform_6, window_bounds = array<i64: 1, 8>}, {transform_indices = @transform_7, window_bounds = array<i64: 16, 8>}]} {
    %c0 = arith.constant 0 : index
    %c0_0 = arith.constant 0 : index
    %0 = vector.load %arg1[%c0, %c0_0] : memref<16x4xf32, #tpu.memory_space<vmem>>, vector<16x4xf32>
    %c0_1 = arith.constant 0 : index
    %c0_2 = arith.constant 0 : index
    %1 = vector.load %arg2[%c0_1, %c0_2] : memref<4x128xf32, #tpu.memory_space<vmem>>, vector<4x128xf32>
    %2 = vector.extract_strided_slice %0 {offsets = [0, 0], sizes = [16, 1], strides = [1, 1]} : vector<16x4xf32> to vector<16x1xf32>
    %3 = vector.extract_strided_slice %1 {offsets = [0, 0], sizes = [1, 128], strides = [1, 1]} : vector<4x128xf32> to vector<1x128xf32>
    %4 = vector.broadcast %2 : vector<16x1xf32> to vector<16x128xf32>
    %5 = vector.broadcast %3 : vector<1x128xf32> to vector<16x128xf32>
    %6 = arith.mulf %4, %5 : vector<16x128xf32>
    %7 = vector.extract_strided_slice %0 {offsets = [0, 1], sizes = [16, 1], strides = [1, 1]} : vector<16x4xf32> to vector<16x1xf32>
    %8 = vector.extract_strided_slice %1 {offsets = [1, 0], sizes = [1, 128], strides = [1, 1]} : vector<4x128xf32> to vector<1x128xf32>
    %9 = vector.broadcast %7 : vector<16x1xf32> to vector<16x128xf32>
    %10 = vector.broadcast %8 : vector<1x128xf32> to vector<16x128xf32>
    %11 = arith.mulf %9, %10 : vector<16x128xf32>
    %12 = arith.addf %6, %11 : vector<16x128xf32>
    %13 = vector.extract_strided_slice %0 {offsets = [0, 2], sizes = [16, 1], strides = [1, 1]} : vector<16x4xf32> to vector<16x1xf32>
    %14 = vector.extract_strided_slice %1 {offsets = [2, 0], sizes = [1, 128], strides = [1, 1]} : vector<4x128xf32> to vector<1x128xf32>
    %15 = vector.broadcast %13 : vector<16x1xf32> to vector<16x128xf32>
    %16 = vector.broadcast %14 : vector<1x128xf32> to vector<16x128xf32>
    %17 = arith.mulf %15, %16 : vector<16x128xf32>
    %18 = arith.addf %12, %17 : vector<16x128xf32>
    %19 = vector.extract_strided_slice %0 {offsets = [0, 3], sizes = [16, 1], strides = [1, 1]} : vector<16x4xf32> to vector<16x1xf32>
    %20 = vector.extract_strided_slice %1 {offsets = [3, 0], sizes = [1, 128], strides = [1, 1]} : vector<4x128xf32> to vector<1x128xf32>
    %21 = vector.broadcast %19 : vector<16x1xf32> to vector<16x128xf32>
    %22 = vector.broadcast %20 : vector<1x128xf32> to vector<16x128xf32>
    %23 = arith.mulf %21, %22 : vector<16x128xf32>
    %24 = arith.addf %18, %23 : vector<16x128xf32>
    %c0_3 = arith.constant 0 : index
    %c0_4 = arith.constant 0 : index
    %25 = vector.load %arg3[%c0_3, %c0_4] : memref<1x128xf32, #tpu.memory_space<vmem>>, vector<1x128xf32>
    %26 = vector.broadcast %25 : vector<1x128xf32> to vector<16x128xf32>
    %27 = arith.addf %24, %26 : vector<16x128xf32>
    %cst = arith.constant 0.000000e+00 : f32
    %28 = vector.broadcast %cst : f32 to vector<16x128xf32>
    %29 = arith.maximumf %27, %28 : vector<16x128xf32>
    %c0_5 = arith.constant 0 : index
    %c0_6 = arith.constant 0 : index
    %30 = vector.load %arg4[%c0_5, %c0_6] : memref<128x128xf32, #tpu.memory_space<vmem>>, vector<128x128xf32>
    %cst_7 = arith.constant dense<0.000000e+00> : vector<16x128xf32>
    %31 = tpu.matmul %29, %30, %cst_7 {dimension_numbers = #tpu.dot_dimension_numbers<[1], [0], [0], [1], [0, 0, 1, 1], [], []>} : vector<16x128xf32>, vector<128x128xf32>, vector<16x128xf32> -> vector<16x128xf32>
    %c0_8 = arith.constant 0 : index
    %c0_9 = arith.constant 0 : index
    %32 = vector.load %arg5[%c0_8, %c0_9] : memref<1x128xf32, #tpu.memory_space<vmem>>, vector<1x128xf32>
    %33 = vector.broadcast %32 : vector<1x128xf32> to vector<16x128xf32>
    %34 = arith.addf %31, %33 : vector<16x128xf32>
    %cst_10 = arith.constant 0.000000e+00 : f32
    %35 = vector.broadcast %cst_10 : f32 to vector<16x128xf32>
    %36 = arith.maximumf %34, %35 : vector<16x128xf32>
    %c0_11 = arith.constant 0 : index
    %c0_12 = arith.constant 0 : index
    %37 = vector.load %arg6[%c0_11, %c0_12] : memref<128x8xf32, #tpu.memory_space<vmem>>, vector<128x8xf32>
    %cst_13 = arith.constant dense<0.000000e+00> : vector<16x8xf32>
    %38 = tpu.matmul %36, %37, %cst_13 {dimension_numbers = #tpu.dot_dimension_numbers<[1], [0], [0], [1], [0, 0, 1, 1], [], []>} : vector<16x128xf32>, vector<128x8xf32>, vector<16x8xf32> -> vector<16x8xf32>
    %c0_14 = arith.constant 0 : index
    %c0_15 = arith.constant 0 : index
    %39 = vector.load %arg7[%c0_14, %c0_15] : memref<1x8xf32, #tpu.memory_space<vmem>>, vector<1x8xf32>
    %40 = vector.broadcast %39 : vector<1x8xf32> to vector<16x8xf32>
    %41 = arith.addf %38, %40 : vector<16x8xf32>
    %c0_16 = arith.constant 0 : index
    %c0_17 = arith.constant 0 : index
    %42 = vector.load %arg8[%c0_16, %c0_17] : memref<16x8xf32, #tpu.memory_space<vmem>>, vector<16x8xf32>
    tpu.vector_store %arg8[%c0_16, %c0_17], %41 {strides = array<i32>} : memref<16x8xf32, #tpu.memory_space<vmem>>, vector<16x8xf32>,
    return
  }
  func.func @transform_0(%arg0: i32) -> (i32, i32) {
    %c0_i32 = arith.constant 0 : i32
    %c0_i32_0 = arith.constant 0 : i32
    return %arg0, %c0_i32 : i32, i32
  }
  func.func @transform_1(%arg0: i32) -> (i32, i32) {
    %c0_i32 = arith.constant 0 : i32
    %c0_i32_0 = arith.constant 0 : i32
    %c0_i32_1 = arith.constant 0 : i32
    return %c0_i32, %c0_i32_0 : i32, i32
  }
  func.func @transform_2(%arg0: i32) -> (i32, i32) {
    %c0_i32 = arith.constant 0 : i32
    %c0_i32_0 = arith.constant 0 : i32
    %c0_i32_1 = arith.constant 0 : i32
    return %c0_i32, %c0_i32_0 : i32, i32
  }
  func.func @transform_3(%arg0: i32) -> (i32, i32) {
    %c0_i32 = arith.constant 0 : i32
    %c0_i32_0 = arith.constant 0 : i32
    %c0_i32_1 = arith.constant 0 : i32
    return %c0_i32, %c0_i32_0 : i32, i32
  }
  func.func @transform_4(%arg0: i32) -> (i32, i32) {
    %c0_i32 = arith.constant 0 : i32
    %c0_i32_0 = arith.constant 0 : i32
    %c0_i32_1 = arith.constant 0 : i32
    return %c0_i32, %c0_i32_0 : i32, i32
  }
  func.func @transform_5(%arg0: i32) -> (i32, i32) {
    %c0_i32 = arith.constant 0 : i32
    %c0_i32_0 = arith.constant 0 : i32
    %c0_i32_1 = arith.constant 0 : i32
    return %c0_i32, %c0_i32_0 : i32, i32
  }
  func.func @transform_6(%arg0: i32) -> (i32, i32) {
    %c0_i32 = arith.constant 0 : i32
    %c0_i32_0 = arith.constant 0 : i32
    %c0_i32_1 = arith.constant 0 : i32
    return %c0_i32, %c0_i32_0 : i32, i32
  }
  func.func @transform_7(%arg0: i32) -> (i32, i32) {
    %c0_i32 = arith.constant 0 : i32
    %c0_i32_0 = arith.constant 0 : i32
    return %arg0, %c0_i32 : i32, i32
  }
}

</mosaic_0001>

<bundles_post_ra>
// kernel: pinn_forward.1
= control target key start
LH: loop header
LB: loop body
LE: loop exit
PB: predicated region body
PF: predicated region fallthrough
CT: control target
= control target key end

     0   :  { %v232_v0 = vmov 2   ;;  %v233_v1 = vmov 0   ;;  %v234_v9 = vmov 3   ;;  %v235_v10 = vmov 1   ;;  %s396_s0 = inlined_call_operand.vmem [shape: f32[16,4], index: 0, kind: input, shape index: {}]   ;;  %s397_s3 = inlined_call_operand.vmem [shape: f32[128,128], index: 3, kind: input, shape index: {}]   ;;  %s398_s2 = inlined_call_operand.vmem [shape: f32[1,128], index: 2, kind: input, shape index: {}]   ;;  %s399_s4 = inlined_call_operand.vmem [shape: f32[1,128], index: 4, kind: input, shape index: {}]   ;;  %s400_s5 = inlined_call_operand.vmem [shape: f32[128,8], index: 5, kind: input, shape index: {}]   ;;  %s401_s1 = inlined_call_operand.vmem [shape: f32[4,128], index: 1, kind: input, shape index: {}]   ;;  %s402_s6 = inlined_call_operand.vmem [shape: f32[1,8], index: 6, kind: input, shape index: {}]   ;;  %s403_s7 = inlined_call_operand.vmem [shape: f32[16,8], index: 7, kind: output, shape index: {}]  }
   0x1   :  { %222 = vset.pattern.permute.xlu1 %v232_v0  ;;  %220 = vset.pattern.permute.xlu0 %v233_v1  ;;  %v27_v2 = vld [vmem:[%s396_s0 + $0x8] sm:$0xff]  ;;  %v104_v3 = vld [vmem:[%s397_s3 + $0x78] sm:$0xff]  ;;  %v103_v4 = vld [vmem:[%s397_s3 + $0x70] sm:$0xff]  ;;  %vm177_vm0 = vcmask 64512  }
   0x2   :  { %60 = vperm.xlu1 %222, %v27_v2   ;;  %36 = vperm.xlu0 %220, %v27_v2   ;;  %v26_v5 = vld [vmem:[%s396_s0] sm:$0xff]  ;;  %v102_v6 = vld [vmem:[%s397_s3 + $0x68] sm:$0xff]  ;;  %v100_v8 = vld [vmem:[%s397_s3 + $0x58] sm:$0xff] }
   0x3   :  { %224 = vset.pattern.permute.xlu2 %v233_v1  ;;  %184 = vmatpush.msra.mxu2 %v104_v3  ;;  %v101_v7 = vld [vmem:[%s397_s3 + $0x60] sm:$0xff]  ;;  %v99_v11 = vld [vmem:[%s397_s3 + $0x50] sm:$0xff]  ;;  %v98_v12 = vld [vmem:[%s397_s3 + $0x48] sm:$0xff] }
   0x4   :  { %31 = vperm.xlu2 %224, %v26_v5   ;;  %109 = vmatpush.msra.mxu0 %v104_v3  ;;  %v97_v13 = vld [vmem:[%s397_s3 + $0x40] sm:$0xff]  ;;  %v96_v14 = vld [vmem:[%s397_s3 + $0x38] sm:$0xff]  ;;  %v95_v15 = vld [vmem:[%s397_s3 + $0x30] sm:$0xff] }
   0x5   :  { %185 = vmatpush.msra.mxu2 %v103_v4  ;;  %v94_v16 = vld [vmem:[%s397_s3 + $0x28] sm:$0xff]  ;;  %v93_v17 = vld [vmem:[%s397_s3 + $0x20] sm:$0xff]  ;;  %v92_v18 = vld [vmem:[%s397_s3 + $0x18] sm:$0xff] }
   0x6   :  { %110 = vmatpush.msra.mxu0 %v103_v4  ;;  %v91_v19 = vld [vmem:[%s397_s3 + $0x10] sm:$0xff]  ;;  %v90_v20 = vld [vmem:[%s397_s3 + $0x8] sm:$0xff]  ;;  %v89_v21 = vld [vmem:[%s397_s3] sm:$0xff] }
   0x7   :  { %186 = vmatpush.msra.mxu2 %v102_v6  ;;  %v149_v22 = vld [vmem:[%s400_s5 + $0x78] sm:$0xff]  ;;  %v148_v23 = vld [vmem:[%s400_s5 + $0x70] sm:$0xff]  ;;  %v147_v25 = vld [vmem:[%s400_s5 + $0x68] sm:$0xff] }
   0x8   :  { %111 = vmatpush.msra.mxu0 %v102_v6  ;;  %200 = vmatpush.msra.mxu3 %v149_v22  ;;  %v146_v28 = vld [vmem:[%s400_s5 + $0x60] sm:$0xff]  ;;  %v145_v30 = vld [vmem:[%s400_s5 + $0x58] sm:$0xff]  ;;  %v144_v31 = vld [vmem:[%s400_s5 + $0x50] sm:$0xff] }
   0x9   :  { %187 = vmatpush.msra.mxu2 %v101_v7  ;;  %154 = vmatpush.msra.mxu1 %v149_v22  ;;  %v28_v29 = vld [vmem:[%s401_s1] sm:$0xf]  ;;  %v143_v33 = vld [vmem:[%s400_s5 + $0x48] sm:$0xff]  ;;  %v141_v43 = vld [vmem:[%s400_s5 + $0x38] sm:$0xff] }
   0xa   :  { %223 = vset.pattern.permute.xlu1 %v234_v9  ;;  %221 = vset.pattern.permute.xlu0 %v235_v10  ;;  %v39_v32 = vperm.slane %v28_v29, 0  ;;  %v63_v34 = vperm.slane %v28_v29, 2  ;;  %v50_v35 = vperm.slane %v28_v29, 1  ;;  %v76_v37 = vperm.slane %v28_v29, 3  ;;  %v142_v40 = vld [vmem:[%s400_s5 + $0x40] sm:$0xff]  ;;  %v140_v47 = vld [vmem:[%s400_s5 + $0x30] sm:$0xff] }
   0xb   :  { %73 = vperm.xlu1 %223, %v27_v2   ;;  %47 = vperm.xlu0 %221, %v27_v2   ;;  %v229_v49 = vld [vmem:[%s398_s2] ss:$0 sm:$0xff]  ;;  %v139_v52 = vld [vmem:[%s400_s5 + $0x28] sm:$0xff]  ;;  %v137_v61 = vld [vmem:[%s400_s5 + $0x18] sm:$0xff] }
   0xc   :  { %225 = vset.pattern.permute.xlu2 %v235_v10  ;;  %188 = vmatpush.msra.mxu2 %v100_v8  ;;  %v138_v55 = vld [vmem:[%s400_s5 + $0x20] sm:$0xff]  ;;  %v136_v3 = vld [vmem:[%s400_s5 + $0x10] sm:$0xff]  ;;  %v135_v4 = vld [vmem:[%s400_s5 + $0x8] sm:$0xff] }
   0xd   :  { %43 = vperm.xlu2 %225, %v26_v5   ;;  %112 = vmatpush.msra.mxu0 %v101_v7  ;;  %v230_v6 = vld [vmem:[%s399_s4] ss:$0 sm:$0xff] }
   0xe   :  { %189 = vmatpush.msra.mxu2 %v99_v11  ;;  %201 = vmatpush.msra.mxu3 %v148_v23 }
   0xf   :  { %113 = vmatpush.msra.mxu0 %v100_v8  ;;  %155 = vmatpush.msra.mxu1 %v148_v23 }
  0x10   :  { %190 = vmatpush.msra.mxu2 %v98_v12  ;;  %202 = vmatpush.msra.mxu3 %v147_v25 }
  0x11   :  { %114 = vmatpush.msra.mxu0 %v99_v11  ;;  %156 = vmatpush.msra.mxu1 %v147_v25 }
  0x12   :  { %191 = vmatpush.msra.mxu2 %v97_v13  ;;  %203 = vmatpush.msra.mxu3 %v146_v28 }
  0x13   :  { %226 = vset.pattern.permute.xlu1 %v232_v0  ;;  %228 = vset.pattern.permute.xlu0 %v234_v9 }
  0x14   :  { %56 = vperm.xlu1 %226, %v26_v5   ;;  %115 = vmatpush.msra.mxu0 %v98_v12 }
  0x15   :  { %227 = vset.pattern.permute.xlu2 %v234_v9  ;;  %192 = vmatpush.msra.mxu2 %v96_v14 }
  0x16   :  { %69 = vperm.xlu2 %227, %v26_v5   ;;  %116 = vmatpush.msra.mxu0 %v97_v13  ;;  %v134_v5 = vld [vmem:[%s400_s5] sm:$0xff] }
  0x17   :  { %193 = vmatpush.msra.mxu2 %v95_v15  ;;  %157 = vmatpush.msra.mxu1 %v146_v28  ;;  %v231_v13 = vld [vmem:[%s402_s6] ss:$0 sm:$0xff] }
  0x18   :  { %117 = vmatpush.msra.mxu0 %v96_v14  ;;  %204 = vmatpush.msra.mxu3 %v145_v30 }
  0x19   :  { %194 = vmatpush.msra.mxu2 %v94_v16  ;;  %158 = vmatpush.msra.mxu1 %v145_v30 }
  0x1a   :  { %118 = vmatpush.msra.mxu0 %v95_v15  ;;  %205 = vmatpush.msra.mxu3 %v144_v31 }
  0x1b   :  { %195 = vmatpush.msra.mxu2 %v93_v17  ;;  %159 = vmatpush.msra.mxu1 %v144_v31 }
  0x1c   :  { %119 = vmatpush.msra.mxu0 %v94_v16  ;;  %206 = vmatpush.msra.mxu3 %v143_v33 }
  0x1d   :  { %196 = vmatpush.msra.mxu2 %v92_v18  ;;  %160 = vmatpush.msra.mxu1 %v143_v33 }
  0x1e   :  { %120 = vmatpush.msra.mxu0 %v93_v17  ;;  %207 = vmatpush.msra.mxu3 %v142_v40 }
  0x1f   :  { %197 = vmatpush.msra.mxu2 %v91_v19  ;;  %161 = vmatpush.msra.mxu1 %v142_v40 }
  0x20   :  { %121 = vmatpush.msra.mxu0 %v92_v18  ;;  %208 = vmatpush.msra.mxu3 %v141_v43 }
  0x21   :  { %198 = vmatpush.msra.mxu2 %v90_v20  ;;  %162 = vmatpush.msra.mxu1 %v141_v43 }
  0x22   :  { %122 = vmatpush.msra.mxu0 %v91_v19  ;;  %209 = vmatpush.msra.mxu3 %v140_v47 }
  0x23   :  { %199 = vmatpush.msra.mxu2 %v89_v21  ;;  %163 = vmatpush.msra.mxu1 %v140_v47 }
  0x24   :  { %123 = vmatpush.msra.mxu0 %v90_v20  ;;  %210 = vmatpush.msra.mxu3 %v139_v52 }
  0x25   :  { %164 = vmatpush.msra.mxu1 %v139_v52 }
  0x26   :  { %124 = vmatpush.msra.mxu0 %v89_v21  ;;  %211 = vmatpush.msra.mxu3 %v138_v55 }
  0x27   :  { %165 = vmatpush.msra.mxu1 %v138_v55 }
  0x28   :  { %212 = vmatpush.msra.mxu3 %v137_v61 }
  0x29   :  { %166 = vmatpush.msra.mxu1 %v137_v61 }
  0x2a   :  { %213 = vmatpush.msra.mxu3 %v136_v3 }
  0x2b   :  { %167 = vmatpush.msra.mxu1 %v136_v3 }
  0x2c   :  { %214 = vmatpush.msra.mxu3 %v135_v4 }
  0x2d   :  { %168 = vmatpush.msra.mxu1 %v135_v4 }
  0x2e   :  { %215 = vmatpush.msra.mxu3 %v134_v5 }
  0x2f   :  { %169 = vmatpush.msra.mxu1 %v134_v5 }
  0x5e   :  { %v32_v24 = vpop.permute.xlu2 %31 }
  0x5f   :  { %v40_v50 = vmul.f32 %v39_v32, %v32_v24 }
  0x67   :  { %v44_v36 = vpop.permute.xlu2 %43 }
  0x68   :  { %v51_v51 = vmul.f32 %v50_v35, %v44_v36 }
  0x6a   :  { %v53_v58 = vadd.f32 %v51_v51, %v40_v50 }
  0x70   :  { %v70_v54 = vpop.permute.xlu2 %69 }
  0x71   :  { %v77_v60 = vmul.f32 %v76_v37, %v70_v54 }
  0x74   :  { %v37_v26 = vpop.permute.xlu0 %36  ;;  %v61_v27 = vpop.permute.xlu1 %60 }
  0x75   :  { %v41_v41 = vmul.f32 %v39_v32, %v37_v26  ;;  %v65_v44 = vmul.f32 %v63_v34, %v61_v27 }
  0x7d   :  { %v48_v38 = vpop.permute.xlu0 %47  ;;  %v74_v39 = vpop.permute.xlu1 %73 }
  0x7e   :  { %v52_v42 = vmul.f32 %v50_v35, %v48_v38  ;;  %v78_v46 = vmul.f32 %v76_v37, %v74_v39 }
  0x80   :  { %v54_v45 = vadd.f32 %v52_v42, %v41_v41 }
  0x82   :  { %v67_v48 = vadd.f32 %v65_v44, %v54_v45 }
  0x84   :  { %v80_v53 = vadd.f32 %v78_v46, %v67_v48 }
  0x86   :  { %v57_v56 = vpop.permute.xlu1 %56  ;;  %v86_v57 = vadd.f32 %v229_v49, %v80_v53 }
  0x87   :  { %v64_v59 = vmul.f32 %v63_v34, %v57_v56 }
  0x88   :  { %v88_v62 = vmax.f32 %v86_v57, 0.0 }
  0x89   :  { %v66_v63 = vadd.f32 %v64_v59, %v53_v58 }
  0x8a   :  { %128 = vmatmul.f32.vlgmr.msra.gmra.mxu2 %v88_v62 }
  0x8b   :  { %v79_v0 = vadd.f32 %v77_v60, %v66_v63 }
  0x8d   :  { %v85_v1 = vadd.f32 %v229_v49, %v79_v0 }
  0x8f   :  { %v87_v2 = vmax.f32 %v85_v1, 0.0 }
  0x91   :  { %125 = vmatmul.f32.vlgmr.msra.gmra.mxu0 %v87_v2 }
 0x10d   :  { %v129_v7 = vpop.f32.mrf.mxu2 }
 0x10e   :  { %v130_v8 = vadd.f32 %v230_v6, %v129_v7  ;;  %v126_v9 = vpop.f32.mrf.mxu0 }
 0x10f   :  { %v127_v10 = vadd.f32 %v230_v6, %v126_v9 }
 0x110   :  { %v133_v11 = vmax.f32 %v130_v8, 0.0 }
 0x111   :  { %v132_v12 = vmax.f32 %v127_v10, 0.0 }
 0x112   :  { %173 = vmatmul.f32.vlgmr.msra.gmra.mxu3 %v133_v11 }
 0x113   :  { %170 = vmatmul.f32.vlgmr.msra.gmra.mxu1 %v132_v12 }
 0x190   :  { %v171_v14 = vpop.f32.mrf.mxu1 }
 0x191   :  { %v172_v15 = vadd.f32 %v231_v13, %v171_v14 }
 0x193   :  { %178 = vst.msk [vmem:[%s403_s7] sm:$0xff] %vm177_vm0, %v172_v15 }
 0x195   :  { %v174_v16 = vpop.f32.mrf.mxu3 }
 0x196   :  { %v175_v17 = vadd.f32 %v231_v13, %v174_v16 }
 0x198   :  { %179 = vst.msk [vmem:[%s403_s7 + $0x8] sm:$0xff] %vm177_vm0, %v175_v17 }

</bundles_post_ra>
